<compile_context>
chip_gen: v5e
topology: v5e:2x2
jax: 0.10.0
libtpu: 0.0.40
codegen_flags: <defaults>
</compile_context>

<pallas_src>
import functools

import numpy as np

import jax
import jax.numpy as jnp
from jax import lax
from jax.experimental import pallas as pl
from jax.experimental.pallas import tpu as pltpu

KSIZE = 3
INPLANES = 4
PLANES = 8
DILATION = 1
H = 16
W = 16


# ----------------------------------------------------------------------------
# Fused kernel: the whole residual Block in a single grid step.
# Activations are a lane-dense (N*H, W*Cpad) slab; everything stays on-chip.
# ----------------------------------------------------------------------------
def _block_kernel(x_ref, b1_ref, c1_ref, b2_ref, c2_ref, b3_ref,
                  bsk_ref, csk_ref, o_ref, *, img_h):
    # x_ref  : (M, W*Cp)   M = N*H rows, channels padded to Cp=8 -> 128 lanes
    # bN_ref : (3*W*Ci, W*Co) bf16  row-stacked banded depthwise+pointwise(+BN scale)
    # cN_ref : (1, W*Co)   f32     folded BN bias tiled across W (sep3: none, is_last)
    # bsk_ref: (W*Cp, W*Co) bf16   block-diagonal 1x1 skip conv (BN scale folded)
    # csk_ref: (1, W*Co)   f32     skip-branch BN shift, tiled
    # o_ref  : (M, W*Co)
    f32 = jnp.float32
    bf16 = jnp.bfloat16

    x = x_ref[...]                                    # (M, W*Cp) f32
    m, wc = x.shape

    # Row index within each image (the batch is folded along the row axis).
    row = lax.broadcasted_iota(jnp.int32, (m, wc), 0) % img_h
    has_above = row > 0            # row h-1 exists inside this image
    has_below = row < img_h - 1    # row h+1 exists inside this image

    def shift_cat(a):
        # (M, K) -> (M, 3K): rows shifted by -1 / 0 / +1 within each image.
        # pltpu.roll (jnp.roll semantics) + mask zeroes wrapped rows AND rows
        # that would bleed across the folded batch boundary.
        up = jnp.where(has_above, pltpu.roll(a, shift=1, axis=0), 0.0)      # a[m-1]
        dn = jnp.where(has_below, pltpu.roll(a, shift=m - 1, axis=0), 0.0)  # a[m+1]
        return jnp.concatenate([up, a, dn], axis=-1)

    def mm(a, w_ref):
        # bf16 operands, f32 accumulation: single MXU pass per matmul.
        return jnp.dot(a.astype(bf16), w_ref[...], preferred_element_type=f32)

    y = mm(shift_cat(jnp.maximum(x, 0.0)), b1_ref) + c1_ref[...]   # ReLU->Sep1->BN1
    y = mm(shift_cat(jnp.maximum(y, 0.0)), b2_ref) + c2_ref[...]   # ReLU->Sep2->BN2
    y = mm(shift_cat(y), b3_ref)                                   # Sep3 (is_last: no BN)
    skip = mm(x, bsk_ref) + csk_ref[...]                           # Conv1x1 + BN (skip)
    o_ref[...] = (y + skip).astype(o_ref.dtype)


def block_forward(x, kp):
    """x: (N, H, W, INPLANES) NHWC -> (N, H, W, PLANES)."""
    n, h, w, cin = x.shape
    cp = PLANES                                   # padded input channel count
    xp = jnp.pad(x, ((0, 0), (0, 0), (0, 0), (0, cp - cin)))   # 4 -> 8 channels
    x2d = xp.reshape(n * h, w * cp)               # lane-dense slab (free reshape)
    m = n * h

    out2d = pl.pallas_call(
        functools.partial(_block_kernel, img_h=h),
        out_shape=jax.ShapeDtypeStruct((m, w * PLANES), x.dtype),
        grid=(1,),                                # single step: batch folded into M
        in_specs=[
            pl.BlockSpec((m, w * cp), lambda i: (0, 0)),
            pl.BlockSpec(kp['B1'].shape, lambda i: (0, 0)),
            pl.BlockSpec(kp['c1'].shape, lambda i: (0, 0)),
            pl.BlockSpec(kp['B2'].shape, lambda i: (0, 0)),
            pl.BlockSpec(kp['c2'].shape, lambda i: (0, 0)),
            pl.BlockSpec(kp['B3'].shape, lambda i: (0, 0)),
            pl.BlockSpec(kp['Bsk'].shape, lambda i: (0, 0)),
            pl.BlockSpec(kp['csk'].shape, lambda i: (0, 0)),
        ],
        out_specs=pl.BlockSpec((m, w * PLANES), lambda i: (0, 0)),
        compiler_params=pltpu.CompilerParams(
            dimension_semantics=("arbitrary",)),
    )(x2d, kp['B1'], kp['c1'], kp['B2'], kp['c2'], kp['B3'], kp['Bsk'], kp['csk'])
    return out2d.reshape(n, h, w, PLANES)


# ----------------------------------------------------------------------------
# Parameters (deterministic, in-script) + one-time host-side folding.
# ----------------------------------------------------------------------------
def _bn_fold(key, c, eps=1e-5):
    k1, k2, k3, k4 = jax.random.split(key, 4)
    gamma = jax.random.uniform(k1, (c,), jnp.float32, 0.5, 1.5)
    beta = jax.random.normal(k2, (c,), jnp.float32) * 0.1
    mean = jax.random.normal(k3, (c,), jnp.float32) * 0.1
    var = jax.random.uniform(k4, (c,), jnp.float32, 0.5, 1.5)
    scale = gamma * lax.rsqrt(var + eps)
    shift = beta - mean * scale
    return scale, shift


def init_params(key):
    # "PyTorch-like" parameters: depthwise taps (9, C) with row = kh*3 + kw,
    # pointwise (Cin, Cout), eval-mode BN scale/shift, 1x1 skip conv + BN.
    ks = jax.random.split(key, 10)
    p = {}
    p['dw1'] = jax.random.normal(ks[0], (9, INPLANES), jnp.float32) * 0.2
    p['pw1'] = jax.random.normal(ks[1], (INPLANES, PLANES), jnp.float32) * 0.2
    p['s1'], p['b1'] = _bn_fold(ks[2], PLANES)
    p['dw2'] = jax.random.normal(ks[3], (9, PLANES), jnp.float32) * 0.2
    p['pw2'] = jax.random.normal(ks[4], (PLANES, PLANES), jnp.float32) * 0.2
    p['s2'], p['b2'] = _bn_fold(ks[5], PLANES)
    p['dw3'] = jax.random.normal(ks[6], (9, PLANES), jnp.float32) * 0.2
    p['pw3'] = jax.random.normal(ks[7], (PLANES, PLANES), jnp.float32) * 0.2
    p['w_skip'] = jax.random.normal(ks[8], (INPLANES, PLANES), jnp.float32) * 0.2
    p['ss'], p['sb'] = _bn_fold(ks[9], PLANES)
    return p


def prepare_kernel_params(p):
    """One-time host-side folding of Block params into kernel operands (bf16)."""
    assert DILATION == 1  # TODO(synk): dilation != 1 needs per-layer row shifts
    cp = PLANES

    def npf(a):
        return np.asarray(a, dtype=np.float32)

    def pad_c(a, axis, to):
        a = npf(a)
        pad = [(0, 0)] * a.ndim
        pad[axis] = (0, to - a.shape[axis])
        return np.pad(a, pad)

    def band_stacked(dw9, pw_scaled, ci, co, dil):
        # Fold depthwise tap (kh,kw) + column (kw) shift + pointwise 1x1 + BN
        # scale into a banded (W*ci, W*co) matrix per kernel row, then stack the
        # 3 kernel rows along K -> (3*W*ci, W*co), matching the kernel's
        # [shift(-1), shift(0), shift(+1)] concat order.
        B = np.zeros((KSIZE, W * ci, W * co), np.float32)
        for kh in range(KSIZE):
            for kw in range(KSIZE):
                blk = dw9[kh * KSIZE + kw][:, None] * pw_scaled        # (ci, co)
                for wi in range(W):
                    wp = wi + dil * (kw - 1)
                    if 0 <= wp < W:
                        B[kh, wp * ci:(wp + 1) * ci, wi * co:(wi + 1) * co] = blk
        return jnp.asarray(B.reshape(KSIZE * W * ci, W * co), jnp.bfloat16)

    def bias_row(b):
        return jnp.asarray(np.tile(npf(b), W).reshape(1, W * PLANES), jnp.float32)

    # Layer 1: zero-pad input channels 4 -> 8 (zero weight rows for pad lanes).
    dw1 = pad_c(p['dw1'], 1, cp)                         # (9, 8)
    pw1s = pad_c(p['pw1'], 0, cp) * npf(p['s1'])[None, :]  # (8, 8), BN1 folded
    B1 = band_stacked(dw1, pw1s, cp, PLANES, DILATION)

    pw2s = npf(p['pw2']) * npf(p['s2'])[None, :]
    B2 = band_stacked(npf(p['dw2']), pw2s, PLANES, PLANES, DILATION)

    B3 = band_stacked(npf(p['dw3']), npf(p['pw3']), PLANES, PLANES, 1)  # is_last: no BN

    # Skip branch: block-diagonal 1x1 conv with the skip BN scale folded in.
    wsk = pad_c(p['w_skip'], 0, cp) * npf(p['ss'])[None, :]   # (8, 8)
    Bsk = np.zeros((W * cp, W * PLANES), np.float32)
    for wi in range(W):
        Bsk[wi * cp:(wi + 1) * cp, wi * PLANES:(wi + 1) * PLANES] = wsk

    return {
        'B1': B1, 'c1': bias_row(p['b1']),
        'B2': B2, 'c2': bias_row(p['b2']),
        'B3': B3,
        'Bsk': jnp.asarray(Bsk, jnp.bfloat16), 'csk': bias_row(p['sb']),
    }


# ----------------------------------------------------------------------------
# Pure-JAX f32 reference (mirrors the PyTorch forward) for verification.
# ----------------------------------------------------------------------------
def ref_block(x, p):
    hp = lax.Precision.HIGHEST

    def sep(x_, dw9, pw, dilation):
        cin = x_.shape[-1]
        d = dilation
        xp = jnp.pad(x_, ((0, 0), (d, d), (d, d), (0, 0)))
        wk = dw9.reshape(KSIZE, KSIZE, cin)[:, :, None, :]   # HWIO, depthwise
        y = lax.conv_general_dilated(
            xp, wk, (1, 1), 'VALID', rhs_dilation=(d, d),
            dimension_numbers=('NHWC', 'HWIO', 'NHWC'),
            feature_group_count=cin, precision=hp)
        return jnp.einsum('nhwc,cd->nhwd', y, pw, precision=hp)

    y = sep(jax.nn.relu(x), p['dw1'], p['pw1'], DILATION) * p['s1'] + p['b1']
    y = sep(jax.nn.relu(y), p['dw2'], p['pw2'], DILATION) * p['s2'] + p['b2']
    y = sep(y, p['dw3'], p['pw3'], 1)
    skip = jnp.einsum('nhwc,cd->nhwd', x, p['w_skip'], precision=hp) * p['ss'] + p['sb']
    return y + skip


if __name__ == "__main__":
    key = jax.random.PRNGKey(0)
    kx, kparam = jax.random.split(key)
    # NHWC input (equivalent PyTorch NCHW input would be (2, 4, 16, 16)).
    x = jax.random.normal(kx, (2, H, W, INPLANES), jnp.float32)
    params = init_params(kparam)
    kparams = prepare_kernel_params(params)

    out = jax.block_until_ready(block_forward(x, kparams))
    ref = jax.block_until_ready(ref_block(x, params))

    assert out.shape == (2, H, W, PLANES), out.shape
    err = float(jnp.max(jnp.abs(out - ref)))
    # Tolerance reflects bf16 MXU operands (f32 accumulation) vs. the pure-f32
    # reference; genuine routing/shift/bias bugs show up at >= 1e-1.
    if err < 3e-2:
        print("KERNEL_OK")
    else:
        print(f"MISMATCH max_abs_err={err}")
</pallas_src>

<mosaic_0001>
module attributes {stable_mosaic.version = 11 : i64} {
  func.func @_block_kernel(%arg0: i32, %arg1: memref<32x128xf32, #tpu.memory_space<vmem>>, %arg2: memref<384x128xbf16, #tpu.memory_space<vmem>>, %arg3: memref<1x128xf32, #tpu.memory_space<vmem>>, %arg4: memref<384x128xbf16, #tpu.memory_space<vmem>>, %arg5: memref<1x128xf32, #tpu.memory_space<vmem>>, %arg6: memref<384x128xbf16, #tpu.memory_space<vmem>>, %arg7: memref<128x128xbf16, #tpu.memory_space<vmem>>, %arg8: memref<1x128xf32, #tpu.memory_space<vmem>>, %arg9: memref<32x128xf32, #tpu.memory_space<vmem>>) attributes {dimension_semantics = [#tpu.dimension_semantics<arbitrary>], iteration_bounds = array<i64: 1>, scalar_prefetch = 0 : i64, scratch_operands = 0 : i64, tpu.core_type = #tpu.core_type<tc>, window_params = [{pipeline_mode = #tpu.pipeline_mode<synchronous>, transform_indices = @transform_0, window_bounds = array<i64: 32, 128>}, {pipeline_mode = #tpu.pipeline_mode<synchronous>, transform_indices = @transform_1, window_bounds = array<i64: 384, 128>}, {pipeline_mode = #tpu.pipeline_mode<synchronous>, transform_indices = @transform_2, window_bounds = array<i64: 1, 128>}, {pipeline_mode = #tpu.pipeline_mode<synchronous>, transform_indices = @transform_3, window_bounds = array<i64: 384, 128>}, {pipeline_mode = #tpu.pipeline_mode<synchronous>, transform_indices = @transform_4, window_bounds = array<i64: 1, 128>}, {pipeline_mode = #tpu.pipeline_mode<synchronous>, transform_indices = @transform_5, window_bounds = array<i64: 384, 128>}, {pipeline_mode = #tpu.pipeline_mode<synchronous>, transform_indices = @transform_6, window_bounds = array<i64: 128, 128>}, {pipeline_mode = #tpu.pipeline_mode<synchronous>, transform_indices = @transform_7, window_bounds = array<i64: 1, 128>}, {pipeline_mode = #tpu.pipeline_mode<synchronous>, transform_indices = @transform_8, window_bounds = array<i64: 32, 128>}]} {
    %c0 = arith.constant 0 : index
    %c0_0 = arith.constant 0 : index
    %0 = vector.load %arg1[%c0, %c0_0] : memref<32x128xf32, #tpu.memory_space<vmem>>, vector<32x128xf32>
    %1 = tpu.iota {dimensions = array<i32: 0>} : vector<32x128xi32>
    %c16_i32 = arith.constant 16 : i32
    %c0_i32 = arith.constant 0 : i32
    %2 = arith.cmpi eq, %c16_i32, %c0_i32 : i32
    %c1_i32 = arith.constant 1 : i32
    %3 = arith.select %2, %c1_i32, %c16_i32 : i32
    %4 = vector.broadcast %3 : i32 to vector<32x128xi32>
    %5 = arith.remsi %1, %4 : vector<32x128xi32>
    %c0_i32_1 = arith.constant 0 : i32
    %6 = vector.broadcast %c0_i32_1 : i32 to vector<32x128xi32>
    %7 = arith.cmpi ne, %5, %6 : vector<32x128xi32>
    %c0_i32_2 = arith.constant 0 : i32
    %8 = vector.broadcast %c0_i32_2 : i32 to vector<32x128xi32>
    %9 = arith.cmpi slt, %5, %8 : vector<32x128xi32>
    %c0_i32_3 = arith.constant 0 : i32
    %10 = arith.cmpi slt, %3, %c0_i32_3 : i32
    %11 = vector.broadcast %10 : i1 to vector<32x128xi1>
    %12 = vector.broadcast %11 : vector<32x128xi1> to vector<32x128xi1>
    %13 = arith.xori %9, %12 : vector<32x128xi1>
    %14 = arith.andi %13, %7 : vector<32x128xi1>
    %15 = vector.broadcast %3 : i32 to vector<32x128xi32>
    %16 = arith.addi %5, %15 : vector<32x128xi32>
    %17 = arith.select %14, %16, %5 : vector<32x128xi1>, vector<32x128xi32>
    %c0_i32_4 = arith.constant 0 : i32
    %18 = vector.broadcast %c0_i32_4 : i32 to vector<32x128xi32>
    %19 = arith.cmpi sgt, %17, %18 : vector<32x128xi32>
    %c15_i32 = arith.constant 15 : i32
    %20 = vector.broadcast %c15_i32 : i32 to vector<32x128xi32>
    %21 = arith.cmpi slt, %17, %20 : vector<32x128xi32>
    %cst = arith.constant 0.000000e+00 : f32
    %22 = vector.broadcast %cst : f32 to vector<32x128xf32>
    %23 = arith.maximumf %0, %22 : vector<32x128xf32>
    %c1_i32_5 = arith.constant 1 : i32
    %24 = tpu.dynamic_rotate %23 by %c1_i32_5 dim 0 : vector<32x128xf32>, i32 -> vector<32x128xf32>
    %cst_6 = arith.constant 0.000000e+00 : f32
    %25 = vector.broadcast %cst_6 : f32 to vector<32x128xf32>
    %26 = arith.select %19, %24, %25 : vector<32x128xi1>, vector<32x128xf32>
    %c31_i32 = arith.constant 31 : i32
    %27 = tpu.dynamic_rotate %23 by %c31_i32 dim 0 : vector<32x128xf32>, i32 -> vector<32x128xf32>
    %cst_7 = arith.constant 0.000000e+00 : f32
    %28 = vector.broadcast %cst_7 : f32 to vector<32x128xf32>
    %29 = arith.select %21, %27, %28 : vector<32x128xi1>, vector<32x128xf32>
    %30 = tpu.concatenate %26, %23, %29 in 1 : vector<32x128xf32>, vector<32x128xf32>, vector<32x128xf32> -> vector<32x384xf32>
    %31 = arith.truncf %30 : vector<32x384xf32> to vector<32x384xbf16>
    %c0_8 = arith.constant 0 : index
    %c0_9 = arith.constant 0 : index
    %32 = vector.load %arg2[%c0_8, %c0_9] : memref<384x128xbf16, #tpu.memory_space<vmem>>, vector<384x128xbf16>
    %cst_10 = arith.constant dense<0.000000e+00> : vector<32x128xf32>
    %33 = tpu.matmul %31, %32, %cst_10 {dimension_numbers = #tpu.dot_dimension_numbers<[1], [0], [0], [1], [0, 0, 1, 1], [], []>} : vector<32x384xbf16>, vector<384x128xbf16>, vector<32x128xf32> -> vector<32x128xf32>
    %c0_11 = arith.constant 0 : index
    %c0_12 = arith.constant 0 : index
    %34 = vector.load %arg3[%c0_11, %c0_12] : memref<1x128xf32, #tpu.memory_space<vmem>>, vector<1x128xf32>
    %35 = vector.broadcast %34 : vector<1x128xf32> to vector<32x128xf32>
    %36 = arith.addf %33, %35 : vector<32x128xf32>
    %cst_13 = arith.constant 0.000000e+00 : f32
    %37 = vector.broadcast %cst_13 : f32 to vector<32x128xf32>
    %38 = arith.maximumf %36, %37 : vector<32x128xf32>
    %c1_i32_14 = arith.constant 1 : i32
    %39 = tpu.dynamic_rotate %38 by %c1_i32_14 dim 0 : vector<32x128xf32>, i32 -> vector<32x128xf32>
    %cst_15 = arith.constant 0.000000e+00 : f32
    %40 = vector.broadcast %cst_15 : f32 to vector<32x128xf32>
    %41 = arith.select %19, %39, %40 : vector<32x128xi1>, vector<32x128xf32>
    %c31_i32_16 = arith.constant 31 : i32
    %42 = tpu.dynamic_rotate %38 by %c31_i32_16 dim 0 : vector<32x128xf32>, i32 -> vector<32x128xf32>
    %cst_17 = arith.constant 0.000000e+00 : f32
    %43 = vector.broadcast %cst_17 : f32 to vector<32x128xf32>
    %44 = arith.select %21, %42, %43 : vector<32x128xi1>, vector<32x128xf32>
    %45 = tpu.concatenate %41, %38, %44 in 1 : vector<32x128xf32>, vector<32x128xf32>, vector<32x128xf32> -> vector<32x384xf32>
    %46 = arith.truncf %45 : vector<32x384xf32> to vector<32x384xbf16>
    %c0_18 = arith.constant 0 : index
    %c0_19 = arith.constant 0 : index
    %47 = vector.load %arg4[%c0_18, %c0_19] : memref<384x128xbf16, #tpu.memory_space<vmem>>, vector<384x128xbf16>
    %cst_20 = arith.constant dense<0.000000e+00> : vector<32x128xf32>
    %48 = tpu.matmul %46, %47, %cst_20 {dimension_numbers = #tpu.dot_dimension_numbers<[1], [0], [0], [1], [0, 0, 1, 1], [], []>} : vector<32x384xbf16>, vector<384x128xbf16>, vector<32x128xf32> -> vector<32x128xf32>
    %c0_21 = arith.constant 0 : index
    %c0_22 = arith.constant 0 : index
    %49 = vector.load %arg5[%c0_21, %c0_22] : memref<1x128xf32, #tpu.memory_space<vmem>>, vector<1x128xf32>
    %50 = vector.broadcast %49 : vector<1x128xf32> to vector<32x128xf32>
    %51 = arith.addf %48, %50 : vector<32x128xf32>
    %c1_i32_23 = arith.constant 1 : i32
    %52 = tpu.dynamic_rotate %51 by %c1_i32_23 dim 0 : vector<32x128xf32>, i32 -> vector<32x128xf32>
    %cst_24 = arith.constant 0.000000e+00 : f32
    %53 = vector.broadcast %cst_24 : f32 to vector<32x128xf32>
    %54 = arith.select %19, %52, %53 : vector<32x128xi1>, vector<32x128xf32>
    %c31_i32_25 = arith.constant 31 : i32
    %55 = tpu.dynamic_rotate %51 by %c31_i32_25 dim 0 : vector<32x128xf32>, i32 -> vector<32x128xf32>
    %cst_26 = arith.constant 0.000000e+00 : f32
    %56 = vector.broadcast %cst_26 : f32 to vector<32x128xf32>
    %57 = arith.select %21, %55, %56 : vector<32x128xi1>, vector<32x128xf32>
    %58 = tpu.concatenate %54, %51, %57 in 1 : vector<32x128xf32>, vector<32x128xf32>, vector<32x128xf32> -> vector<32x384xf32>
    %59 = arith.truncf %58 : vector<32x384xf32> to vector<32x384xbf16>
    %c0_27 = arith.constant 0 : index
    %c0_28 = arith.constant 0 : index
    %60 = vector.load %arg6[%c0_27, %c0_28] : memref<384x128xbf16, #tpu.memory_space<vmem>>, vector<384x128xbf16>
    %cst_29 = arith.constant dense<0.000000e+00> : vector<32x128xf32>
    %61 = tpu.matmul %59, %60, %cst_29 {dimension_numbers = #tpu.dot_dimension_numbers<[1], [0], [0], [1], [0, 0, 1, 1], [], []>} : vector<32x384xbf16>, vector<384x128xbf16>, vector<32x128xf32> -> vector<32x128xf32>
    %62 = arith.truncf %0 : vector<32x128xf32> to vector<32x128xbf16>
    %c0_30 = arith.constant 0 : index
    %c0_31 = arith.constant 0 : index
    %63 = vector.load %arg7[%c0_30, %c0_31] : memref<128x128xbf16, #tpu.memory_space<vmem>>, vector<128x128xbf16>
    %cst_32 = arith.constant dense<0.000000e+00> : vector<32x128xf32>
    %64 = tpu.matmul %62, %63, %cst_32 {dimension_numbers = #tpu.dot_dimension_numbers<[1], [0], [0], [1], [0, 0, 1, 1], [], []>} : vector<32x128xbf16>, vector<128x128xbf16>, vector<32x128xf32> -> vector<32x128xf32>
    %c0_33 = arith.constant 0 : index
    %c0_34 = arith.constant 0 : index
    %65 = vector.load %arg8[%c0_33, %c0_34] : memref<1x128xf32, #tpu.memory_space<vmem>>, vector<1x128xf32>
    %66 = vector.broadcast %65 : vector<1x128xf32> to vector<32x128xf32>
    %67 = arith.addf %64, %66 : vector<32x128xf32>
    %68 = arith.addf %61, %67 : vector<32x128xf32>
    %c0_35 = arith.constant 0 : index
    %c0_36 = arith.constant 0 : index
    %69 = vector.load %arg9[%c0_35, %c0_36] : memref<32x128xf32, #tpu.memory_space<vmem>>, vector<32x128xf32>
    tpu.vector_store %arg9[%c0_35, %c0_36], %68 {strides = array<i32>} : memref<32x128xf32, #tpu.memory_space<vmem>>, vector<32x128xf32>,
    return
  }
  func.func @transform_0(%arg0: i32) -> (i32, i32) {
    %c0_i32 = arith.constant 0 : i32
    %c0_i32_0 = arith.constant 0 : i32
    %c0_i32_1 = arith.constant 0 : i32
    return %c0_i32, %c0_i32_0 : i32, i32
  }
  func.func @transform_1(%arg0: i32) -> (i32, i32) {
    %c0_i32 = arith.constant 0 : i32
    %c0_i32_0 = arith.constant 0 : i32
    %c0_i32_1 = arith.constant 0 : i32
    return %c0_i32, %c0_i32_0 : i32, i32
  }
  func.func @transform_2(%arg0: i32) -> (i32, i32) {
    %c0_i32 = arith.constant 0 : i32
    %c0_i32_0 = arith.constant 0 : i32
    %c0_i32_1 = arith.constant 0 : i32
    return %c0_i32, %c0_i32_0 : i32, i32
  }
  func.func @transform_3(%arg0: i32) -> (i32, i32) {
    %c0_i32 = arith.constant 0 : i32
    %c0_i32_0 = arith.constant 0 : i32
    %c0_i32_1 = arith.constant 0 : i32
    return %c0_i32, %c0_i32_0 : i32, i32
  }
  func.func @transform_4(%arg0: i32) -> (i32, i32) {
    %c0_i32 = arith.constant 0 : i32
    %c0_i32_0 = arith.constant 0 : i32
    %c0_i32_1 = arith.constant 0 : i32
    return %c0_i32, %c0_i32_0 : i32, i32
  }
  func.func @transform_5(%arg0: i32) -> (i32, i32) {
    %c0_i32 = arith.constant 0 : i32
    %c0_i32_0 = arith.constant 0 : i32
    %c0_i32_1 = arith.constant 0 : i32
    return %c0_i32, %c0_i32_0 : i32, i32
  }
  func.func @transform_6(%arg0: i32) -> (i32, i32) {
    %c0_i32 = arith.constant 0 : i32
    %c0_i32_0 = arith.constant 0 : i32
    %c0_i32_1 = arith.constant 0 : i32
    return %c0_i32, %c0_i32_0 : i32, i32
  }
  func.func @transform_7(%arg0: i32) -> (i32, i32) {
    %c0_i32 = arith.constant 0 : i32
    %c0_i32_0 = arith.constant 0 : i32
    %c0_i32_1 = arith.constant 0 : i32
    return %c0_i32, %c0_i32_0 : i32, i32
  }
  func.func @transform_8(%arg0: i32) -> (i32, i32) {
    %c0_i32 = arith.constant 0 : i32
    %c0_i32_0 = arith.constant 0 : i32
    %c0_i32_1 = arith.constant 0 : i32
    return %c0_i32, %c0_i32_0 : i32, i32
  }
}

</mosaic_0001>

<bundles_post_ra>
// kernel: tpu_custom_call.1
= control target key start
LH: loop header
LB: loop body
LE: loop exit
PB: predicated region body
PF: predicated region fallthrough
CT: control target
= control target key end

     0   :  { %13 = vsyncpa [#allocation3], 0  ;;  %s1992_s0 = inlined_call_operand.hbm [shape: f32[32,128], index: 0, kind: input, shape index: {}]   ;;  %s1993_s1 = inlined_call_operand.hbm [shape: bf16[384,128], index: 1, kind: input, shape index: {}]   ;;  %s1994_s2 = inlined_call_operand.vmem [shape: f32[1,128], index: 2, kind: input, shape index: {}]   ;;  %s1995_s3 = inlined_call_operand.hbm [shape: bf16[384,128], index: 3, kind: input, shape index: {}]   ;;  %s1996_s4 = inlined_call_operand.vmem [shape: f32[1,128], index: 4, kind: input, shape index: {}]   ;;  %s1997_s5 = inlined_call_operand.hbm [shape: bf16[384,128], index: 5, kind: input, shape index: {}]   ;;  %s1998_s6 = inlined_call_operand.hbm [shape: bf16[128,128], index: 6, kind: input, shape index: {}]   ;;  %s1999_s7 = inlined_call_operand.vmem [shape: f32[1,128], index: 7, kind: input, shape index: {}]   ;;  %s2000_s8 = inlined_call_operand.hbm [shape: f32[32,128], index: 8, kind: output, shape index: {}]  }
   0x1   :  { %14 = vsyncpa [#allocation6], 0 }
   0x2   :  { %15 = vsyncpa [#allocation9], 0  ;;  %s34_s29 = sshll.u32 %s1993_s1, 4  ;;  %s35_s29 = int_to_ptr.hbm [resolvable:$true] %s34_s29 }
   0x3   :  { %16 = vsyncpa [#allocation4], 0  ;;  %s1760_s30 = smov [#allocation5]   ;;  %s64_s12 = sshll.u32 %s1997_s5, 4  ;;  %s65_s12 = int_to_ptr.hbm [resolvable:$true] %s64_s12 }
   0x4   :  { %s36_s9 = sshll.u32 %s1760_s30, 4  ;;  %s1761_s13 = smov 64   ;;  %s37_s9 = int_to_ptr.vmem [resolvable:$true] %s36_s9 }
   0x5   :  { %s1762_s14 = smov 4   ;;  %s1763_s15 = smov [#allocation8]  }
   0x6   :  { %42 = dma.hbm_to_vmem [thread:$0]  %s35_s29, 3072, %s37_s9, [#allocation6], %s1761_s13, %s1761_s13, %s1762_s14  }
   0x7   :  { %s66_s16 = sshll.u32 %s1763_s15, 4  ;;  %s21_s18 = sshll.u32 %s1992_s0, 4  ;;  %s67_s16 = int_to_ptr.vmem [resolvable:$true] %s66_s16  ;;  %s22_s18 = int_to_ptr.hbm [resolvable:$true] %s21_s18 }
   0x8   :  { %72 = dma.hbm_to_vmem [thread:$0]  %s65_s12, 3072, %s67_s16, [#allocation9], %s1761_s13, %s1761_s13, %s1762_s14  }
   0x9   :  { %s1764_s5 = smov [#allocation2]   ;;  %s49_s22 = sshll.u32 %s1995_s3, 4  ;;  %s50_s22 = int_to_ptr.hbm [resolvable:$true] %s49_s22 }
   0xa   :  { %s23_s19 = sshll.u32 %s1764_s5, 4  ;;  %s1765_s23 = smov 128   ;;  %s24_s19 = int_to_ptr.vmem [resolvable:$true] %s23_s19 }
   0xb   :  { %s1766_s24 = smov 8   ;;  %s1767_s0 = smov [#allocation7]  }
   0xc   :  { %29 = dma.hbm_to_vmem [thread:$0]  %s22_s18, 512, %s24_s19, [#allocation3], %s1765_s23, %s1765_s23, %s1766_s24  }
   0xd   :  { %s51_s25 = sshll.u32 %s1767_s0, 4  ;;  %s77_s28 = sshll.u32 %s1998_s6, 4  ;;  %s52_s25 = int_to_ptr.vmem [resolvable:$true] %s51_s25  ;;  %s78_s28 = int_to_ptr.hbm [resolvable:$true] %s77_s28 }
   0xe   :  { %57 = dma.hbm_to_vmem [thread:$0]  %s50_s22, 3072, %s52_s25, [#allocation6], %s1761_s13, %s1761_s13, %s1762_s14  }
   0xf   :  { %s1768_s3 = smov [#allocation10]  }
  0x10   :  { %s79_s29 = sshll.u32 %s1768_s3, 4  ;;  %s80_s29 = int_to_ptr.vmem [resolvable:$true] %s79_s29 }
  0x11   :  { %85 = dma.hbm_to_vmem [thread:$0]  %s78_s28, 1024, %s80_s29, [#allocation9], %s1761_s13, %s1761_s13, %s1762_s14  }
  0x12   :  { %1752 = dma.done.wait [#allocation3], 512  }
  0x13   :  { %1753 = vsyncadd [#allocation3], 4294966784 }
  0x14   :  { %1754 = dma.done.wait [#allocation6], 6144  }
  0x15   :  { %1755 = vsyncadd [#allocation6], 4294961152 }
  0x16   :  { %1756 = dma.done.wait [#allocation9], 4096  }
  0x17   :  { %1757 = vsyncadd [#allocation9], 4294963200  ;;  %v1505_v0 = vld [vmem:[#allocation5 + $0x38] sm:$0xff]  ;;  %v1504_v3 = vld [vmem:[#allocation5 + $0x30] sm:$0xff]  ;;  %v112_v12 = vlaneseq  ;;  %vm1769_vm4 = vmmov 1   ;;  %s1127_s14 = sshll.u32 %s2000_s8, 4  ;;  %s1128_s14 = int_to_ptr.hbm [resolvable:$true] %s1127_s14 }
  0x18   :  { %v1513_v1 = vld [vmem:[#allocation5 + $0x78] sm:$0xff]  ;;  %405 = vmatpush.bf16.msra.mxu0 %v1505_v0  ;;  %v1512_v4 = vld [vmem:[#allocation5 + $0x70] sm:$0xff]  ;;  %v1503_v6 = vld [vmem:[#allocation5 + $0x28] sm:$0xff] }
  0x19   :  { %v1521_v2 = vld [vmem:[#allocation5 + $0xb8] sm:$0xff]  ;;  %424 = vmatpush.bf16.msra.mxu1 %v1513_v1  ;;  %v1520_v5 = vld [vmem:[#allocation5 + $0xb0] sm:$0xff]  ;;  %v1511_v7 = vld [vmem:[#allocation5 + $0x68] sm:$0xff]  ;;  %v1852_v19 = vshrl.u32 %v112_v12, 7 }
  0x1a   :  { %443 = vmatpush.bf16.msra.mxu2 %v1521_v2  ;;  %v1519_v8 = vld [vmem:[#allocation5 + $0xa8] sm:$0xff]  ;;  %v1502_v9 = vld [vmem:[#allocation5 + $0x20] sm:$0xff]  ;;  %v1501_v13 = vld [vmem:[#allocation5 + $0x18] sm:$0xff] }
  0x1b   :  { %v1510_v10 = vld [vmem:[#allocation5 + $0x60] sm:$0xff]  ;;  %v1509_v14 = vld [vmem:[#allocation5 + $0x58] sm:$0xff]  ;;  %v1848_v17 = vld [vmem:[#allocation2 + $0x8] sm:$0xff]  ;;  %v114_v28 = vadd.s32 8, %v1852_v19  ;;  %v121_v31 = vand.u32 15, %v1852_v19  ;;  %vm181_vm0 = vcmp.lt.s32.totalorder %v1852_v19, 1 }
  0x1c   :  { %406 = vmatpush.bf16.msra.mxu0 %v1504_v3  ;;  %v1518_v11 = vld [vmem:[#allocation5 + $0xa0] sm:$0xff]  ;;  %v1517_v15 = vld [vmem:[#allocation5 + $0x98] sm:$0xff]  ;;  %v1854_v20 = vld [vmem:[#allocation2 + $0x10] sm:$0xff]  ;;  %v174_v24 = vmax.f32 %v1848_v17, 0.0  ;;  %vm194_vm1 = vcmp.lt.s32.totalorder %v1852_v19, 7  ;;  %v115_v54 = vadd.s32 16, %v1852_v19 }
  0x1d   :  { %425 = vmatpush.bf16.msra.mxu1 %v1512_v4  ;;  %v1846_v16 = vld [vmem:[#allocation2] sm:$0xff]  ;;  %v1850_v18 = vld [vmem:[#allocation2 + $0x18] sm:$0xff]  ;;  %v1500_v21 = vld [vmem:[#allocation5 + $0x10] sm:$0xff]  ;;  %v1864_v27 = vmax.f32 %v1854_v20, 0.0  ;;  %v128_v39 = vand.u32 15, %v114_v28  ;;  %vm165_vm2 = vcmp.gt.s32.totalorder %v121_v31, 0 }
  0x1e   :  { %444 = vmatpush.bf16.msra.mxu2 %v1520_v5  ;;  %v1508_v22 = vld [vmem:[#allocation5 + $0x50] sm:$0xff]  ;;  %v1857_v23 = vmax.f32 %v1846_v16, 0.0  ;;  %v1861_v25 = vmax.f32 %v1850_v18, 0.0  ;;  %v1499_v29 = vld [vmem:[#allocation5 + $0x8] sm:$0xff]  ;;  %v178_v33 = vrot.slane %v174_v24, 7  ;;  %v191_v37 = vrot.slane %v174_v24, 1  ;;  %vm1884_vm5 = vmpackc.low %vm1769_vm4, %vm165_vm2 }
  0x1f   :  { %v1516_v26 = vld [vmem:[#allocation5 + $0x90] sm:$0xff]  ;;  %v1507_v30 = vld [vmem:[#allocation5 + $0x48] sm:$0xff]  ;;  %v192_v38 = vrot.slane %v1864_v27, 1  ;;  %v1498_v40 = vld [vmem:[#allocation5] sm:$0xff]  ;;  %vm170_vm3 = vcmp.lt.s32.totalorder %v128_v39, 15  ;;  %v116_v56 = vadd.s32 24, %v1852_v19 }
  0x20   :  { %407 = vmatpush.bf16.msra.mxu0 %v1503_v6  ;;  %v177_v32 = vrot.slane %v1857_v23, 7  ;;  %v180_v34 = vrot.slane %v1861_v25, 7  ;;  %v1515_v35 = vld [vmem:[#allocation5 + $0x88] sm:$0xff]  ;;  %v190_v36 = vrot.slane %v1857_v23, 1  ;;  %v1506_v41 = vld [vmem:[#allocation5 + $0x40] sm:$0xff]  ;;  %v1537_v47 = vld [vmem:[#allocation7 + $0x78] sm:$0xff]  ;;  %v204_v49 = vpack.c.bf16 %v174_v24, %v1857_v23 }
  0x21   :  { %426 = vmatpush.bf16.msra.mxu1 %v1511_v7  ;;  %v1514_v44 = vld [vmem:[#allocation5 + $0x80] sm:$0xff]  ;;  %v196_v45 = vsel %vm194_vm1, %v191_v37, %v192_v38  ;;  %vm1889_vm6 = vmpackc.low %vm170_vm3, %vm1769_vm4  ;;  %v1536_v53 = vld [vmem:[#allocation7 + $0x70] sm:$0xff]  ;;  %v179_v57 = vrot.slane %v1864_v27, 7  ;;  %v135_v58 = vand.u32 15, %v115_v54  ;;  %v193_v59 = vrot.slane %v1861_v25, 1 }
  0x22   :  { %445 = vmatpush.bf16.msra.mxu2 %v1519_v8  ;;  %v184_v42 = vsel %vm181_vm0, %v177_v32, %v178_v33  ;;  %v185_v43 = vsel %vm181_vm0, %v180_v34, %v177_v32  ;;  %v197_v46 = vsel %vm194_vm1, %v190_v36, %v191_v37  ;;  %v1535_v55 = vld [vmem:[#allocation7 + $0x68] sm:$0xff]  ;;  %v142_v60 = vand.u32 15, %v116_v56  ;;  %v1545_v6 = vld [vmem:[#allocation7 + $0xb8] sm:$0xff]  ;;  %v1534_v7 = vld [vmem:[#allocation7 + $0x60] sm:$0xff] }
  0x23   :  { %v1239_v48 = vpack.c.bf16 %v184_v42, %v185_v43  ;;  %v1245_v51 = vpack.c.bf16 %v196_v45, %v197_v46  ;;  %v182_v61 = vsel %vm181_vm0, %v179_v57, %v180_v34  ;;  %v183_v62 = vsel %vm181_vm0, %v178_v33, %v179_v57  ;;  %v1544_v8 = vld [vmem:[#allocation7 + $0xb0] sm:$0xff]  ;;  %v1530_v23 = vld [vmem:[#allocation7 + $0x40] sm:$0xff]  ;;  %v1523_v32 = vld [vmem:[#allocation7 + $0x8] sm:$0xff] }
  0x24   :  { %408 = vmatpush.bf16.msra.mxu0 %v1502_v9  ;;  %vm167_vm7 = vcmp.gt.s32.totalorder %v135_v58, 0  ;;  %v195_v63 = vsel %vm194_vm1, %v192_v38, %v193_v59  ;;  %v198_v0 = vsel %vm194_vm1, %v193_v59, %v190_v36  ;;  %vm172_vm8 = vcmp.lt.s32.totalorder %v142_v60, 15  ;;  %v1533_v9 = vld [vmem:[#allocation7 + $0x58] sm:$0xff]  ;;  %v1532_v12 = vld [vmem:[#allocation7 + $0x50] sm:$0xff]  ;;  %v1526_v24 = vld [vmem:[#allocation7 + $0x20] sm:$0xff] }
  0x25   :  { %427 = vmatpush.bf16.msra.mxu1 %v1510_v10  ;;  %v1242_v1 = vpack.c.bf16 %v182_v61, %v183_v62  ;;  %v207_v2 = vpack.c.bf16 %v1861_v25, %v1864_v27  ;;  %vm1912_vm9 = vmpackc.low %vm1769_vm4, %vm167_vm7  ;;  %v1248_v4 = vpack.c.bf16 %v198_v0, %v195_v63  ;;  %v1529_v10 = vld [vmem:[#allocation7 + $0x38] sm:$0xff]  ;;  %v1540_v25 = vld [vmem:[#allocation7 + $0x90] sm:$0xff] }
  0x26   :  { %446 = vmatpush.bf16.msra.mxu2 %v1518_v11  ;;  %vm1917_vm10 = vmpackc.low %vm172_vm8, %vm1769_vm4  ;;  %v1543_v11 = vld [vmem:[#allocation7 + $0xa8] sm:$0xff]  ;;  %692 = vmatpush.bf16.msra.mxu3 %v1529_v10  ;;  %v1524_v28 = vld [vmem:[#allocation7 + $0x10] sm:$0xff] }
  0x27   :  { %v1539_v27 = vld [vmem:[#allocation7 + $0x88] sm:$0xff]  ;;  %v1605_v33 = vld [vmem:[%s1994_s2] ss:$0 sm:$0xff]  ;;  %v1577_v57 = vld [vmem:[#allocation10 + $0x38] sm:$0xff] }
  0x28   :  { %409 = vmatpush.bf16.msra.mxu0 %v1501_v13  ;;  %v1528_v13 = vld [vmem:[#allocation7 + $0x30] sm:$0xff]  ;;  %v1522_v34 = vld [vmem:[#allocation7] sm:$0xff] }
  0x29   :  { %428 = vmatpush.bf16.msra.mxu1 %v1509_v14  ;;  %v1542_v14 = vld [vmem:[#allocation7 + $0xa0] sm:$0xff]  ;;  %v1576_v61 = vld [vmem:[#allocation10 + $0x30] sm:$0xff] }
  0x2a   :  { %447 = vmatpush.bf16.msra.mxu2 %v1517_v15  ;;  %v1531_v15 = vld [vmem:[#allocation7 + $0x48] sm:$0xff]  ;;  %693 = vmatpush.bf16.msra.mxu3 %v1528_v13 }
  0x2c   :  { %410 = vmatpush.bf16.msra.mxu0 %v1500_v21  ;;  %v1527_v21 = vld [vmem:[#allocation7 + $0x28] sm:$0xff] }
  0x2d   :  { %429 = vmatpush.bf16.msra.mxu1 %v1508_v22  ;;  %v1541_v22 = vld [vmem:[#allocation7 + $0x98] sm:$0xff] }
  0x2e   :  { %448 = vmatpush.bf16.msra.mxu2 %v1516_v26  ;;  %694 = vmatpush.bf16.msra.mxu3 %v1527_v21  ;;  %v1525_v26 = vld [vmem:[#allocation7 + $0x18] sm:$0xff] }
  0x30   :  { %411 = vmatpush.bf16.msra.mxu0 %v1499_v29  ;;  %v1538_v29 = vld [vmem:[#allocation7 + $0x80] sm:$0xff] }
  0x31   :  { %430 = vmatpush.bf16.msra.mxu1 %v1507_v30 }
  0x32   :  { %449 = vmatpush.bf16.msra.mxu2 %v1515_v35  ;;  %695 = vmatpush.bf16.msra.mxu3 %v1526_v24 }
  0x34   :  { %412 = vmatpush.bf16.msra.mxu0 %v1498_v40 }
  0x35   :  { %431 = vmatpush.bf16.msra.mxu1 %v1506_v41 }
  0x36   :  { %450 = vmatpush.bf16.msra.mxu2 %v1514_v44  ;;  %696 = vmatpush.bf16.msra.mxu3 %v1525_v26 }
  0x37   :  { %1240 = vmatmul.msk.bf16.vlgmr.msra.gmra.mxu0 %vm1884_vm5, %v1239_v48 }
  0x38   :  { %711 = vmatpush.bf16.msrb.mxu0 %v1537_v47  ;;  %432 = vmatmul.bf16.vlgmr.msra.gmra.mxu1 %v204_v49 }
  0x39   :  { %1246 = vmatmul.msk.bf16.vlgmr.msra.gmra.mxu2 %vm1889_vm6, %v1245_v51  ;;  %730 = vmatpush.bf16.msrb.mxu1 %v1545_v6 }
  0x3a   :  { %697 = vmatpush.bf16.msra.mxu3 %v1524_v28  ;;  %897 = vmatpush.bf16.msrb.mxu2 %v1577_v57  ;;  %v1563_v57 = vld [vmem:[#allocation8 + $0x88] sm:$0xff] }
  0x3c   :  { %712 = vmatpush.bf16.msrb.mxu0 %v1536_v53 }
  0x3d   :  { %731 = vmatpush.bf16.msrb.mxu1 %v1544_v8 }
  0x3e   :  { %698 = vmatpush.bf16.msra.mxu3 %v1523_v32  ;;  %898 = vmatpush.bf16.msrb.mxu2 %v1576_v61  ;;  %v1573_v32 = vld [vmem:[#allocation10 + $0x18] sm:$0xff] }
  0x40   :  { %713 = vmatpush.bf16.msrb.mxu0 %v1535_v55 }
  0x41   :  { %732 = vmatpush.bf16.msrb.mxu1 %v1543_v11 }
  0x42   :  { %699 = vmatpush.bf16.msra.mxu3 %v1522_v34  ;;  %v1572_v34 = vld [vmem:[#allocation10 + $0x10] sm:$0xff] }
  0x44   :  { %714 = vmatpush.bf16.msrb.mxu0 %v1534_v7 }
  0x45   :  { %733 = vmatpush.bf16.msrb.mxu1 %v1542_v14 }
  0x47   :  { %1243 = vmatmul.msk.bf16.gmra.mxu0 %vm1912_vm9, %v1242_v1 }
  0x48   :  { %437 = vmatmul.bf16.gmra.mxu1 %v207_v2  ;;  %715 = vmatpush.bf16.msrb.mxu0 %v1533_v9 }
  0x49   :  { %1249 = vmatmul.msk.bf16.gmra.mxu2 %vm1917_vm10, %v1248_v4  ;;  %734 = vmatpush.bf16.msrb.mxu1 %v1541_v22 }
  0x4c   :  { %716 = vmatpush.bf16.msrb.mxu0 %v1532_v12 }
  0x4d   :  { %735 = vmatpush.bf16.msrb.mxu1 %v1540_v25 }
  0x50   :  { %717 = vmatpush.bf16.msrb.mxu0 %v1531_v15 }
  0x51   :  { %736 = vmatpush.bf16.msrb.mxu1 %v1539_v27 }
  0x54   :  { %718 = vmatpush.bf16.msrb.mxu0 %v1530_v23 }
  0x55   :  { %737 = vmatpush.bf16.msrb.mxu1 %v1538_v29 }
  0xb4   :  { %v414_v30 = vpop.f32.mrf.mxu0 }
  0xb5   :  { %v433_v31 = vpop.f32.mrf.mxu1  ;;  %v415_v35 = vadd.f32 %v1605_v33, %v414_v30  ;;  %v1575_v30 = vld [vmem:[#allocation10 + $0x28] sm:$0xff] }
  0xb6   :  { %899 = vmatpush.bf16.msrb.mxu2 %v1575_v30 }
  0xb7   :  { %v434_v39 = vadd.f32 %v433_v31, %v415_v35  ;;  %v1574_v31 = vld [vmem:[#allocation10 + $0x20] sm:$0xff]  ;;  %v1560_v35 = vld [vmem:[#allocation8 + $0x70] sm:$0xff] }
  0xba   :  { %900 = vmatpush.bf16.msrb.mxu2 %v1574_v31 }
  0xbc   :  { %v452_v36 = vpop.f32.mrf.mxu2  ;;  %v416_v37 = vpop.f32.mrf.mxu0 }
  0xbd   :  { %v435_v38 = vpop.f32.mrf.mxu1  ;;  %v417_v40 = vadd.f32 %v1605_v33, %v416_v37  ;;  %v453_v41 = vadd.f32 %v452_v36, %v434_v39  ;;  %v1571_v36 = vld [vmem:[#allocation10 + $0x8] sm:$0xff]  ;;  %v1570_v39 = vld [vmem:[#allocation10] sm:$0xff] }
  0xbe   :  { %901 = vmatpush.bf16.msrb.mxu2 %v1573_v32  ;;  %v1559_v37 = vld [vmem:[#allocation8 + $0x68] sm:$0xff] }
  0xbf   :  { %v436_v42 = vadd.f32 %v435_v38, %v417_v40  ;;  %v462_v47 = vmax.f32 %v453_v41, 0.0  ;;  %v1569_v38 = vld [vmem:[#allocation8 + $0xb8] sm:$0xff]  ;;  %v1558_v40 = vld [vmem:[#allocation8 + $0x60] sm:$0xff]  ;;  %v827_v41 = vpack.c.bf16 %v1848_v17, %v1846_v16  ;;  %v1551_v16 = vld [vmem:[#allocation8 + $0x28] sm:$0xff] }
  0xc0   :  { %1098 = vmatpush.bf16.msra.mxu1 %v1569_v38  ;;  %v1565_v17 = vld [vmem:[#allocation8 + $0x98] sm:$0xff] }
  0xc1   :  { %v478_v62 = vrot.slane %v462_v47, 1  ;;  %v466_v11 = vrot.slane %v462_v47, 7 }
  0xc2   :  { %902 = vmatpush.bf16.msrb.mxu2 %v1572_v34 }
  0xc4   :  { %v454_v43 = vpop.f32.mrf.mxu2  ;;  %v419_v45 = vpop.f32.mrf.mxu0 }
  0xc5   :  { %v455_v44 = vadd.f32 %v454_v43, %v436_v42  ;;  %v420_v46 = vadd.f32 %v1605_v33, %v419_v45  ;;  %v438_v49 = vpop.f32.mrf.mxu1  ;;  %v1568_v42 = vld [vmem:[#allocation8 + $0xb0] sm:$0xff]  ;;  %v1557_v43 = vld [vmem:[#allocation8 + $0x58] sm:$0xff]  ;;  %v1567_v45 = vld [vmem:[#allocation8 + $0xa8] sm:$0xff] }
  0xc6   :  { %903 = vmatpush.bf16.msrb.mxu2 %v1571_v36  ;;  %1099 = vmatpush.bf16.msra.mxu1 %v1568_v42 }
  0xc7   :  { %v463_v48 = vmax.f32 %v455_v44, 0.0  ;;  %v439_v51 = vadd.f32 %v438_v49, %v420_v46  ;;  %v1553_v44 = vld [vmem:[#allocation8 + $0x38] sm:$0xff]  ;;  %v1556_v46 = vld [vmem:[#allocation8 + $0x50] sm:$0xff]  ;;  %v1555_v49 = vld [vmem:[#allocation8 + $0x48] sm:$0xff] }
  0xc8   :  { %1060 = vmatpush.bf16.msrb.mxu3 %v1553_v44 }
  0xc9   :  { %v491_v53 = vpack.c.bf16 %v463_v48, %v462_v47  ;;  %v479_v58 = vrot.slane %v463_v48, 1  ;;  %v467_v9 = vrot.slane %v463_v48, 7  ;;  %v1552_v47 = vld [vmem:[#allocation8 + $0x30] sm:$0xff]  ;;  %v1566_v48 = vld [vmem:[#allocation8 + $0xa0] sm:$0xff] }
  0xca   :  { %904 = vmatpush.bf16.msrb.mxu2 %v1570_v39  ;;  %1100 = vmatpush.bf16.msra.mxu1 %v1567_v45 }
  0xcb   :  { %719 = vmatmul.bf16.vlgmr.msrb.gmra.mxu0 %v491_v53  ;;  %v484_v4 = vsel %vm194_vm1, %v478_v62, %v479_v58  ;;  %v472_v14 = vsel %vm181_vm0, %v466_v11, %v467_v9  ;;  %v1550_v53 = vld [vmem:[#allocation8 + $0x20] sm:$0xff] }
  0xcc   :  { %v457_v54 = vpop.f32.mrf.mxu2  ;;  %v421_v56 = vpop.f32.mrf.mxu0  ;;  %1061 = vmatpush.bf16.msrb.mxu3 %v1552_v47 }
  0xcd   :  { %v458_v55 = vadd.f32 %v457_v54, %v439_v51  ;;  %v422_v60 = vadd.f32 %v1605_v33, %v421_v56  ;;  %v440_v0 = vpop.f32.mrf.mxu1  ;;  %v1561_v33 = vld [vmem:[#allocation8 + $0x78] sm:$0xff]  ;;  %905 = vmatmul.bf16.vlgmr.msrb.gmra.mxu2 %v827_v41  ;;  %v1554_v51 = vld [vmem:[#allocation8 + $0x40] sm:$0xff]  ;;  %v828_v54 = vpack.c.bf16 %v1850_v18, %v1854_v20 }
  0xce   :  { %1079 = vmatpush.bf16.msra.mxu0 %v1561_v33  ;;  %1578 = vmatpush.bf16.msra.mxu2 %v1561_v33  ;;  %v1549_v56 = vld [vmem:[#allocation8 + $0x18] sm:$0xff]  ;;  %v1546_v20 = vld [vmem:[#allocation8] sm:$0xff] }
  0xcf   :  { %v464_v59 = vmax.f32 %v458_v55, 0.0  ;;  %v441_v1 = vadd.f32 %v440_v0, %v422_v60  ;;  %1101 = vmatpush.bf16.msra.mxu1 %v1566_v48  ;;  %v1564_v55 = vld [vmem:[#allocation8 + $0x90] sm:$0xff]  ;;  %v1547_v60 = vld [vmem:[#allocation8 + $0x8] sm:$0xff] }
  0xd0   :  { %1062 = vmatpush.bf16.msrb.mxu3 %v1551_v16 }
  0xd1   :  { %v480_v63 = vrot.slane %v464_v59, 1  ;;  %v468_v26 = vrot.slane %v464_v59, 7 }
  0xd2   :  { %1080 = vmatpush.bf16.msra.mxu0 %v1560_v35  ;;  %1579 = vmatpush.bf16.msra.mxu2 %v1560_v35 }
  0xd3   :  { %v483_v2 = vsel %vm194_vm1, %v479_v58, %v480_v63  ;;  %v471_v28 = vsel %vm181_vm0, %v467_v9, %v468_v26  ;;  %1102 = vmatpush.bf16.msra.mxu1 %v1565_v17  ;;  %v1548_v58 = vld [vmem:[#allocation8 + $0x10] sm:$0xff] }
  0xd4   :  { %v459_v6 = vpop.f32.mrf.mxu2  ;;  %v1353_v7 = vpack.c.bf16 %v483_v2, %v484_v4  ;;  %1063 = vmatpush.bf16.msrb.mxu3 %v1550_v53 }
  0xd5   :  { %v460_v8 = vadd.f32 %v459_v6, %v441_v1 }
  0xd6   :  { %1354 = vmatmul.msk.bf16.vlgmr.msrb.gmra.mxu1 %vm1889_vm6, %v1353_v7  ;;  %1081 = vmatpush.bf16.msra.mxu0 %v1559_v37 }
  0xd7   :  { %v465_v10 = vmax.f32 %v460_v8, 0.0  ;;  %1580 = vmatpush.bf16.msra.mxu2 %v1559_v37  ;;  %1103 = vmatpush.bf16.msra.mxu1 %v1564_v55 }
  0xd8   :  { %1064 = vmatpush.bf16.msrb.mxu3 %v1549_v56 }
  0xd9   :  { %v469_v12 = vrot.slane %v465_v10, 7  ;;  %v494_v13 = vpack.c.bf16 %v465_v10, %v464_v59  ;;  %v481_v22 = vrot.slane %v465_v10, 1  ;;  %v1562_v59 = vld [vmem:[#allocation8 + $0x80] sm:$0xff] }
  0xda   :  { %1082 = vmatpush.bf16.msra.mxu0 %v1558_v40 }
  0xdb   :  { %724 = vmatmul.bf16.gmra.mxu0 %v494_v13  ;;  %v473_v15 = vsel %vm181_vm0, %v469_v12, %v466_v11  ;;  %v482_v23 = vsel %vm194_vm1, %v480_v63, %v481_v22  ;;  %v485_v24 = vsel %vm194_vm1, %v481_v22, %v478_v62  ;;  %v470_v27 = vsel %vm181_vm0, %v468_v26, %v469_v12  ;;  %v1606_v63 = vld [vmem:[%s1996_s4] ss:$0 sm:$0xff] }
  0xdc   :  { %v1347_v21 = vpack.c.bf16 %v472_v14, %v473_v15  ;;  %v1356_v25 = vpack.c.bf16 %v485_v24, %v482_v23  ;;  %v1350_v29 = vpack.c.bf16 %v470_v27, %v471_v28  ;;  %1581 = vmatpush.bf16.msra.mxu2 %v1558_v40  ;;  %1104 = vmatpush.bf16.msra.mxu1 %v1563_v57 }
  0xdd   :  { %910 = vmatmul.bf16.gmra.mxu2 %v828_v54  ;;  %1065 = vmatpush.bf16.msrb.mxu3 %v1548_v58 }
  0xde   :  { %1348 = vmatmul.msk.bf16.vlgmr.msra.gmra.mxu3 %vm1884_vm5, %v1347_v21  ;;  %1083 = vmatpush.bf16.msra.mxu0 %v1557_v43 }
  0xe0   :  { %1582 = vmatpush.bf16.msra.mxu2 %v1557_v43  ;;  %1105 = vmatpush.bf16.msra.mxu1 %v1562_v59 }
  0xe1   :  { %1066 = vmatpush.bf16.msrb.mxu3 %v1547_v60 }
  0xe2   :  { %1084 = vmatpush.bf16.msra.mxu0 %v1556_v46 }
  0xe4   :  { %1583 = vmatpush.bf16.msra.mxu2 %v1556_v46 }
  0xe5   :  { %1067 = vmatpush.bf16.msrb.mxu3 %v1546_v20 }
  0xe6   :  { %1357 = vmatmul.msk.bf16.gmra.mxu1 %vm1917_vm10, %v1356_v25  ;;  %1085 = vmatpush.bf16.msra.mxu0 %v1555_v49 }
  0xe8   :  { %1584 = vmatpush.bf16.msra.mxu2 %v1555_v49  ;;  %v1607_v49 = vld [vmem:[%s1999_s7] ss:$0 sm:$0xff]  ;;  %s1770_s7 = smov [#allocation11]  }
  0xe9   :  { %1586 = vmatpush.bf16.msra.mxu3 %v1569_v38  ;;  %s1125_s11 = sshll.u32 %s1770_s7, 4  ;;  %s1126_s11 = int_to_ptr.vmem [resolvable:$true] %s1125_s11 }
  0xea   :  { %1086 = vmatpush.bf16.msra.mxu0 %v1554_v51 }
  0xec   :  { %1585 = vmatpush.bf16.msra.mxu2 %v1554_v51 }
  0xed   :  { %1587 = vmatpush.bf16.msra.mxu3 %v1568_v42 }
  0xee   :  { %1351 = vmatmul.msk.bf16.gmra.mxu3 %vm1912_vm9, %v1350_v29 }
  0xf1   :  { %1588 = vmatpush.bf16.msra.mxu3 %v1567_v45 }
  0xf5   :  { %1589 = vmatpush.bf16.msra.mxu3 %v1566_v48 }
  0xf9   :  { %1590 = vmatpush.bf16.msra.mxu3 %v1565_v17 }
  0xfd   :  { %1591 = vmatpush.bf16.msra.mxu3 %v1564_v55 }
 0x101   :  { %1592 = vmatpush.bf16.msra.mxu3 %v1563_v57 }
 0x105   :  { %1593 = vmatpush.bf16.msra.mxu3 %v1562_v59 }
 0x148   :  { %v720_v61 = vpop.f32.mrf.mxu0 }
 0x150   :  { %v722_v1 = vpop.f32.mrf.mxu0  ;;  %v906_v48 = vpop.f32.mrf.mxu2 }
 0x151   :  { %v907_v16 = vadd.f32 %v1607_v49, %v906_v48 }
 0x153   :  { %v739_v18 = vpop.f32.mrf.mxu1 }
 0x158   :  { %v725_v12 = vpop.f32.mrf.mxu0  ;;  %v908_v17 = vpop.f32.mrf.mxu2 }
 0x159   :  { %v909_v57 = vadd.f32 %v1607_v49, %v908_v17 }
 0x15b   :  { %v741_v2 = vpop.f32.mrf.mxu1 }
 0x160   :  { %v727_v30 = vpop.f32.mrf.mxu0  ;;  %v911_v19 = vpop.f32.mrf.mxu2 }
 0x161   :  { %v701_v62 = vpop.f32.mrf.mxu3 }
 0x162   :  { %v702_v0 = vadd.f32 %v1606_v63, %v701_v62 }
 0x163   :  { %v744_v15 = vpop.f32.mrf.mxu1 }
 0x164   :  { %v721_v6 = vadd.f32 %v720_v61, %v702_v0 }
 0x166   :  { %v740_v9 = vadd.f32 %v739_v18, %v721_v6 }
 0x168   :  { %v761_v24 = vrot.slane %v740_v9, 1  ;;  %v749_v36 = vrot.slane %v740_v9, 7  ;;  %v913_v62 = vpop.f32.mrf.mxu2 }
 0x169   :  { %v703_v4 = vpop.f32.mrf.mxu3 }
 0x16a   :  { %v704_v7 = vadd.f32 %v1606_v63, %v703_v4 }
 0x16b   :  { %v746_v33 = vpop.f32.mrf.mxu1 }
 0x16c   :  { %v723_v8 = vadd.f32 %v722_v1, %v704_v7  ;;  %v914_v7 = vadd.f32 %v1607_v49, %v913_v62 }
 0x16e   :  { %v742_v10 = vadd.f32 %v741_v2, %v723_v8 }
 0x170   :  { %v774_v11 = vpack.c.bf16 %v742_v10, %v740_v9  ;;  %v762_v22 = vrot.slane %v742_v10, 1  ;;  %v750_v34 = vrot.slane %v742_v10, 7 }
 0x171   :  { %v706_v13 = vpop.f32.mrf.mxu3 }
 0x172   :  { %v707_v14 = vadd.f32 %v1606_v63, %v706_v13  ;;  %1087 = vmatmul.bf16.vlgmr.msra.gmra.mxu0 %v774_v11  ;;  %v767_v29 = vsel %vm194_vm1, %v761_v24, %v762_v22  ;;  %v755_v39 = vsel %vm181_vm0, %v749_v36, %v750_v34 }
 0x174   :  { %v726_v21 = vadd.f32 %v725_v12, %v707_v14 }
 0x176   :  { %v745_v23 = vadd.f32 %v744_v15, %v726_v21 }
 0x178   :  { %v763_v25 = vrot.slane %v745_v23, 1  ;;  %v751_v42 = vrot.slane %v745_v23, 7 }
 0x179   :  { %v708_v26 = vpop.f32.mrf.mxu3 }
 0x17a   :  { %v709_v27 = vadd.f32 %v1606_v63, %v708_v26  ;;  %v766_v28 = vsel %vm194_vm1, %v762_v22, %v763_v25  ;;  %v754_v43 = vsel %vm181_vm0, %v750_v34, %v751_v42  ;;  %v912_v63 = vadd.f32 %v1607_v49, %v911_v19 }
 0x17b   :  { %v1493_v31 = vpack.c.bf16 %v766_v28, %v767_v29 }
 0x17c   :  { %v728_v32 = vadd.f32 %v727_v30, %v709_v27 }
 0x17d   :  { %1494 = vmatmul.msk.bf16.vlgmr.msra.gmra.mxu1 %vm1889_vm6, %v1493_v31 }
 0x17e   :  { %v747_v35 = vadd.f32 %v746_v33, %v728_v32 }
 0x180   :  { %v752_v37 = vrot.slane %v747_v35, 7  ;;  %v777_v38 = vpack.c.bf16 %v747_v35, %v745_v23  ;;  %v764_v45 = vrot.slane %v747_v35, 1 }
 0x182   :  { %1092 = vmatmul.bf16.vlgmr.msra.gmra.mxu2 %v777_v38  ;;  %v756_v40 = vsel %vm181_vm0, %v752_v37, %v749_v36  ;;  %v753_v52 = vsel %vm181_vm0, %v751_v42, %v752_v37  ;;  %v765_v46 = vsel %vm194_vm1, %v763_v25, %v764_v45  ;;  %v768_v47 = vsel %vm194_vm1, %v764_v45, %v761_v24 }
 0x183   :  { %v1487_v41 = vpack.c.bf16 %v755_v39, %v756_v40  ;;  %v1490_v44 = vpack.c.bf16 %v753_v52, %v754_v43  ;;  %v1496_v50 = vpack.c.bf16 %v768_v47, %v765_v46 }
 0x185   :  { %1488 = vmatmul.msk.bf16.vlgmr.msrb.gmra.mxu3 %vm1884_vm5, %v1487_v41 }
 0x195   :  { %1491 = vmatmul.msk.bf16.gmra.mxu3 %vm1912_vm9, %v1490_v44 }
 0x1a5   :  { %1497 = vmatmul.msk.bf16.vlgmr.msra.gmra.mxu3 %vm1917_vm10, %v1496_v50 }
 0x1ef   :  { %v1088_v3 = vpop.f32.mrf.mxu0 }
 0x1f7   :  { %v1090_v5 = vpop.f32.mrf.mxu0 }
 0x1fa   :  { %v1107_v54 = vpop.f32.mrf.mxu1 }
 0x202   :  { %v1109_v61 = vpop.f32.mrf.mxu1 }
 0x205   :  { %v1093_v2 = vpop.f32.mrf.mxu2 }
 0x208   :  { %v1069_v51 = vpop.f32.mrf.mxu3 }
 0x209   :  { %v1070_v53 = vadd.f32 %v1069_v51, %v907_v16 }
 0x20b   :  { %v1089_v55 = vadd.f32 %v1088_v3, %v1070_v53 }
 0x20d   :  { %v1108_v56 = vadd.f32 %v1107_v54, %v1089_v55  ;;  %v1095_v10 = vpop.f32.mrf.mxu2 }
 0x20f   :  { %1117 = vst [vmem:[#allocation11] sm:$0xff] %v1108_v56 }
 0x210   :  { %v1071_v58 = vpop.f32.mrf.mxu3 }
 0x211   :  { %v1072_v59 = vadd.f32 %v1071_v58, %v909_v57 }
 0x213   :  { %v1091_v60 = vadd.f32 %v1090_v5, %v1072_v59 }
 0x215   :  { %v1110_v18 = vadd.f32 %v1109_v61, %v1091_v60 }
 0x217   :  { %1118 = vst [vmem:[#allocation11 + $0x8] sm:$0xff] %v1110_v18 }
 0x218   :  { %v1074_v20 = vpop.f32.mrf.mxu3 }
 0x219   :  { %v1075_v1 = vadd.f32 %v1074_v20, %v912_v63 }
 0x21b   :  { %v1094_v4 = vadd.f32 %v1093_v2, %v1075_v1 }
 0x220   :  { %v1076_v0 = vpop.f32.mrf.mxu3 }
 0x221   :  { %v1077_v9 = vadd.f32 %v1076_v0, %v914_v7 }
 0x223   :  { %v1096_v11 = vadd.f32 %v1095_v10, %v1077_v9 }
 0x228   :  { %v1112_v6 = vpop.f32.mrf.mxu3 }
 0x229   :  { %v1113_v8 = vadd.f32 %v1112_v6, %v1094_v4 }
 0x22b   :  { %1119 = vst [vmem:[#allocation11 + $0x10] sm:$0xff] %v1113_v8 }
 0x230   :  { %v1114_v12 = vpop.f32.mrf.mxu3 }
 0x231   :  { %v1115_v13 = vadd.f32 %v1114_v12, %v1096_v11 }
 0x233   :  { %1120 = vst [vmem:[#allocation11 + $0x18] sm:$0xff] %v1115_v13 }
 0x234   :  { %1133 = dma.vmem_to_hbm [thread:$0]  %s1126_s11, 512, %s1128_s14, [#allocation4], %s1765_s23, %s1765_s23, %s1766_s24  }
 0x235   :  { %1758 = dma.done.wait [#allocation4], 512  }
 0x236   :  { %1759 = vsyncadd [#allocation4], 4294966784 }
 0x237   :  { %1138 = vsyncpa [#allocation3], 1 }
 0x238   :  { %1139 = vsyncpa [#allocation6], 1 }
 0x239   :  { %1140 = vsyncpa [#allocation9], 1 }
 0x23a   :  { %1141 = vsyncpa [#allocation4], 1 }

</bundles_post_ra>
